<compile_context>
chip_gen: v5e
topology: v5e:2x2
jax: 0.10.0
libtpu: 0.0.40
codegen_flags: <defaults>
</compile_context>

<pallas_src>
import functools

import jax
import jax.numpy as jnp
from jax.experimental import pallas as pl
from jax.experimental.pallas import tpu as pltpu


def _round_up(a, m):
    return (a + m - 1) // m * m


def _mlp_poly_kernel(i_ref, j_ref, tblT_ref, w0T_ref, w1T_ref, b1_ref,
                     w2T_ref, b2_ref, w3T_ref, b3_ref, out_ref):
    """One batch tile, transposed layout (batch rides on lanes).

    i_ref/j_ref : (1, block_b) int32 node indices for this tile
    tblT_ref    : (n_in_pad, n_pad) per-node feature table, columns = nodes,
                  rows = [A_1 .. A_K | x | 1 (bias) | 0-pad]
    w0T_ref     : (hidden, n_in_pad) layer-0 weights, b0 folded into the bias row
    w1T/w2T     : (hidden, hidden);  b1/b2 : (hidden, 1)
    w3T         : (1, hidden);       b3    : (1, 1)
    out_ref     : (1, block_b) sigmoid output (lane-dense)
    """
    n_pad = tblT_ref.shape[1]
    block_b = out_ref.shape[1]
    cd = tblT_ref.dtype

    # ---- fused row gather: one-hot (n_pad, block_b) matrices through the MXU ------------
    node_ids = jax.lax.broadcasted_iota(jnp.int32, (n_pad, block_b), 0)
    oh_i = jnp.where(node_ids == i_ref[...], 1.0, 0.0).astype(cd)
    oh_j = jnp.where(node_ids == j_ref[...], 1.0, 0.0).astype(cd)
    tblT = tblT_ref[...]
    fi = jnp.dot(tblT, oh_i, preferred_element_type=jnp.float32)   # (n_in_pad, block_b)
    fj = jnp.dot(tblT, oh_j, preferred_element_type=jnp.float32)

    # Hadamard feature products; the bias row is 1*1 = 1, so b0 rides inside w0T.
    feat = (fi * fj).astype(cd)

    # ---- MLP (all matmuls accumulate in f32) --------------------------------------------
    h = jnp.dot(w0T_ref[...], feat, preferred_element_type=jnp.float32)   # (hidden, block_b)
    h = jnp.maximum(h, 0.0)
    # TODO(synk): nn.Dropout is identity in eval mode; training-mode dropout not implemented.
    h = jnp.dot(w1T_ref[...], h, preferred_element_type=jnp.float32) + b1_ref[...]
    h = jnp.maximum(h, 0.0)
    h = jnp.dot(w2T_ref[...], h, preferred_element_type=jnp.float32) + b2_ref[...]
    h = jnp.maximum(h, 0.0)
    logits = jnp.dot(w3T_ref[...], h, preferred_element_type=jnp.float32) + b3_ref[...]
    out_ref[...] = jax.nn.sigmoid(logits)                                  # (1, block_b)


def _vmem_bytes(block_b, n_pad, n_in_pad, hidden, in_item):
    """Per-step VMEM estimate: double-buffered tiled I/O + resident weights + live temps."""
    io = 2 * (2 * block_b * 4) + 2 * (block_b * 4)           # i/j index tiles + output tile
    tbl = 2 * n_in_pad * n_pad * in_item                     # node-feature table (grid-invariant)
    wts = 2 * (hidden * n_in_pad * in_item                   # w0T (b0 folded in)
               + 2 * (hidden * hidden + hidden) * 4          # w1, b1, w2, b2
               + (hidden + 1) * 4)                           # w3, b3
    tmp = (2 * n_pad * block_b * in_item                     # one-hot gather matrices
           + 2 * n_in_pad * block_b * 4                      # fi / fj (f32)
           + n_in_pad * block_b * in_item                    # feat
           + 2 * hidden * block_b * 4)                       # hidden activations
    return io + tbl + wts + tmp


def mlp_polynomial_features(i_idx, j_idx, x, A_powers, params, *,
                            use_nodefeat=True, block_b=1024,
                            compute_dtype=jnp.bfloat16):
    """Forward pass equivalent to MLPPolynomialFeatures.forward(i, j, x) in eval mode."""
    B = i_idx.shape[0]
    N = A_powers[0].shape[0]
    K = len(A_powers)
    D = x.shape[1] if use_nodefeat else 0
    n_in = N * K + D
    (w0, b0), (w1, b1), (w2, b2), (w3, b3) = params
    hidden = w0.shape[1]

    cd = compute_dtype
    in_item = jnp.dtype(cd).itemsize
    n_in_pad = _round_up(n_in + 1, 128)          # +1 = bias row carrying b0
    n_pad = _round_up(N, 128)                    # node axis padded to full lanes
    lane_pad = n_in_pad - (n_in + 1)

    # ---- generation-aware VMEM budget ----------------------------------------------------
    try:
        cap = int(pltpu.get_tpu_info().vmem_capacity_bytes)
    except Exception:                            # not on TPU / API mismatch -> conservative
        cap = 64 << 20
    budget = max(32 << 20, min(cap - (16 << 20), cap * 3 // 4))   # ~96 MiB v5e/v6e, ~48 MiB v7x

    # ---- batch-tile selection: big, multiple of 128, VMEM-aware, >=2 steps if possible ---
    block_b = max(128, _round_up(int(block_b), 128))
    block_b = min(block_b, _round_up(B, 128))
    while block_b > 128 and _vmem_bytes(block_b, n_pad, n_in_pad, hidden, in_item) > budget:
        block_b = max(128, _round_up(block_b // 2, 128))
    if _round_up(B, 128) >= 2 * 128 and _round_up(B, block_b) // block_b < 2:
        # keep >=2 grid steps so ("parallel",) can use both v7x TensorCores
        block_b = max(128, _round_up(_round_up(B, 128) // 2, 128))
    B_pad = _round_up(B, block_b)
    num_blocks = B_pad // block_b

    est = _vmem_bytes(block_b, n_pad, n_in_pad, hidden, in_item)
    vmem_limit = int(min(cap - (8 << 20), max(budget, est + (8 << 20))))

    # ---- per-node feature table (transposed: batch will ride on lanes in the kernel) -----
    parts = [A_n.astype(cd) for A_n in A_powers]
    if use_nodefeat:
        parts.append(x.astype(cd))
    parts.append(jnp.ones((N, 1), cd))                       # bias column -> 1 * 1 = 1
    if lane_pad:
        parts.append(jnp.zeros((N, lane_pad), cd))
    tbl = jnp.concatenate(parts, axis=1)                     # (N, n_in_pad)
    if n_pad > N:
        tbl = jnp.concatenate([tbl, jnp.zeros((n_pad - N, n_in_pad), cd)], axis=0)
    tblT = tbl.T                                             # (n_in_pad, n_pad)

    # layer-0 weights with b0 folded into the bias row, transposed to (hidden, n_in_pad)
    w0T = jnp.concatenate(
        [w0.astype(cd), b0.reshape(1, -1).astype(cd),
         jnp.zeros((lane_pad, hidden), cd)], axis=0).T

    w1T = w1.astype(jnp.float32).T
    w2T = w2.astype(jnp.float32).T
    w3T = w3.astype(jnp.float32).T                           # (1, hidden)
    b1c = b1.reshape(-1, 1).astype(jnp.float32)              # (hidden, 1)
    b2c = b2.reshape(-1, 1).astype(jnp.float32)
    b3c = b3.reshape(1, 1).astype(jnp.float32)

    # ---- indices: int32, batch-padded, lane-major -----------------------------------------
    def prep_idx(idx):
        idx = idx.astype(jnp.int32)
        if B_pad > B:
            idx = jnp.concatenate([idx, jnp.zeros((B_pad - B,), jnp.int32)])
        return idx.reshape(1, B_pad)

    i2d = prep_idx(i_idx)
    j2d = prep_idx(j_idx)

    def lane_tiled(width):
        return pl.BlockSpec((1, width), lambda b: (0, b))

    def whole(arr):
        return pl.BlockSpec(arr.shape, lambda b: (0, 0))

    out = pl.pallas_call(
        _mlp_poly_kernel,
        out_shape=jax.ShapeDtypeStruct((1, B_pad), jnp.float32),
        grid_spec=pltpu.PrefetchScalarGridSpec(
            num_scalar_prefetch=0,
            grid=(num_blocks,),
            in_specs=[lane_tiled(block_b), lane_tiled(block_b),
                      whole(tblT), whole(w0T),
                      whole(w1T), whole(b1c),
                      whole(w2T), whole(b2c),
                      whole(w3T), whole(b3c)],
            out_specs=lane_tiled(block_b),
        ),
        compiler_params=pltpu.CompilerParams(
            dimension_semantics=("parallel",),
            vmem_limit_bytes=vmem_limit),
    )(i2d, j2d, tblT, w0T, w1T, b1c, w2T, b2c, w3T, b3c)

    return out[0, :B]                                        # matches x.view(-1)


if __name__ == "__main__":
    key = jax.random.PRNGKey(0)
    num_nodes, dim_feat, hidden, K = 16, 8, 32, 2
    B = 300                      # not a multiple of the tile size: exercises padding path
    use_nodefeat = True
    n_in = num_nodes * K + dim_feat

    keys = jax.random.split(key, 8)

    # deterministic symmetric adjacency with zero diagonal (stand-in for A.toarray())
    A = (jax.random.uniform(keys[0], (num_nodes, num_nodes)) < 0.3).astype(jnp.float32)
    A = jnp.maximum(A, A.T) * (1.0 - jnp.eye(num_nodes, dtype=jnp.float32))
    A_powers = [A]
    for _ in range(1, K):
        A_powers.append(A_powers[-1] @ A)

    x = jax.random.normal(keys[1], (num_nodes, dim_feat), dtype=jnp.float32)
    i_idx = jax.random.randint(keys[2], (B,), 0, num_nodes)
    j_idx = jax.random.randint(keys[3], (B,), 0, num_nodes)

    # deterministic nn.Linear-style init: U(-1/sqrt(fan_in), 1/sqrt(fan_in))
    def linear_init(k, fan_in, fan_out):
        kw, kb = jax.random.split(k)
        bound = 1.0 / float(fan_in) ** 0.5
        w = jax.random.uniform(kw, (fan_in, fan_out), minval=-bound, maxval=bound,
                               dtype=jnp.float32)
        b = jax.random.uniform(kb, (1, fan_out), minval=-bound, maxval=bound,
                               dtype=jnp.float32)
        return w, b

    params = [linear_init(keys[4], n_in, hidden),
              linear_init(keys[5], hidden, hidden),
              linear_init(keys[6], hidden, hidden),
              linear_init(keys[7], hidden, 1)]

    fwd_bf16 = jax.jit(functools.partial(
        mlp_polynomial_features, use_nodefeat=use_nodefeat,
        block_b=1024, compute_dtype=jnp.bfloat16))
    fwd_f32 = jax.jit(functools.partial(
        mlp_polynomial_features, use_nodefeat=use_nodefeat,
        block_b=1024, compute_dtype=jnp.float32))

    out_bf16 = jax.block_until_ready(fwd_bf16(i_idx, j_idx, x, A_powers, params))
    out_f32 = jax.block_until_ready(fwd_f32(i_idx, j_idx, x, A_powers, params))

    # pure-JAX f32 reference (eval-mode PyTorch semantics)
    def ref(i_idx, j_idx, x):
        hi = jax.lax.Precision.HIGHEST
        A_emb = [A_n[i_idx] * A_n[j_idx] for A_n in A_powers]
        feat = jnp.concatenate(A_emb + [x[i_idx] * x[j_idx]], axis=1)
        h = feat
        for (w, b) in params[:-1]:
            h = jax.nn.relu(jnp.dot(h, w, precision=hi) + b)
        w, b = params[-1]
        return jax.nn.sigmoid(jnp.dot(h, w, precision=hi) + b).reshape(-1)

    ref_out = jax.block_until_ready(ref(i_idx, j_idx, x))

    assert out_f32.shape == (B,) and out_bf16.shape == (B,)
    # f32 kernel path must match the module semantics tightly
    assert jnp.allclose(out_f32, ref_out, atol=5e-3, rtol=5e-3), \
        float(jnp.max(jnp.abs(out_f32 - ref_out)))
    # bf16-storage path: only input/W0 quantization noise is allowed
    assert jnp.allclose(out_bf16, ref_out, atol=5e-2, rtol=5e-2), \
        float(jnp.max(jnp.abs(out_bf16 - ref_out)))
    print("KERNEL_OK")
</pallas_src>

<mosaic_0001>
module attributes {stable_mosaic.version = 11 : i64} {
  func.func @_mlp_poly_kernel(%arg0: i32, %arg1: memref<1x256xi32, #tpu.memory_space<vmem>>, %arg2: memref<1x256xi32, #tpu.memory_space<vmem>>, %arg3: memref<128x128xbf16, #tpu.memory_space<vmem>>, %arg4: memref<32x128xbf16, #tpu.memory_space<vmem>>, %arg5: memref<32x32xf32, #tpu.memory_space<vmem>>, %arg6: memref<32x1xf32, #tpu.memory_space<vmem>>, %arg7: memref<32x32xf32, #tpu.memory_space<vmem>>, %arg8: memref<32x1xf32, #tpu.memory_space<vmem>>, %arg9: memref<1x32xf32, #tpu.memory_space<vmem>>, %arg10: memref<1x1xf32, #tpu.memory_space<vmem>>, %arg11: memref<1x256xf32, #tpu.memory_space<vmem>>) attributes {dimension_semantics = [#tpu.dimension_semantics<parallel>], iteration_bounds = array<i64: 2>, scalar_prefetch = 0 : i64, scratch_operands = 0 : i64, tpu.core_type = #tpu.core_type<tc>, window_params = [{transform_indices = @transform_0, window_bounds = array<i64: 1, 256>}, {transform_indices = @transform_1, window_bounds = array<i64: 1, 256>}, {pipeline_mode = #tpu.pipeline_mode<synchronous>, transform_indices = @transform_2, window_bounds = array<i64: 128, 128>}, {pipeline_mode = #tpu.pipeline_mode<synchronous>, transform_indices = @transform_3, window_bounds = array<i64: 32, 128>}, {pipeline_mode = #tpu.pipeline_mode<synchronous>, transform_indices = @transform_4, window_bounds = array<i64: 32, 32>}, {pipeline_mode = #tpu.pipeline_mode<synchronous>, transform_indices = @transform_5, window_bounds = array<i64: 32, 1>}, {pipeline_mode = #tpu.pipeline_mode<synchronous>, transform_indices = @transform_6, window_bounds = array<i64: 32, 32>}, {pipeline_mode = #tpu.pipeline_mode<synchronous>, transform_indices = @transform_7, window_bounds = array<i64: 32, 1>}, {pipeline_mode = #tpu.pipeline_mode<synchronous>, transform_indices = @transform_8, window_bounds = array<i64: 1, 32>}, {pipeline_mode = #tpu.pipeline_mode<synchronous>, transform_indices = @transform_9, window_bounds = array<i64: 1, 1>}, {transform_indices = @transform_10, window_bounds = array<i64: 1, 256>}]} {
    %0 = tpu.iota {dimensions = array<i32: 0>} : vector<128x256xi32>
    %c0 = arith.constant 0 : index
    %c0_0 = arith.constant 0 : index
    %1 = vector.load %arg1[%c0, %c0_0] : memref<1x256xi32, #tpu.memory_space<vmem>>, vector<1x256xi32>
    %2 = vector.broadcast %1 : vector<1x256xi32> to vector<128x256xi32>
    %3 = arith.cmpi eq, %0, %2 : vector<128x256xi32>
    %cst = arith.constant 1.000000e+00 : f32
    %cst_1 = arith.constant 0.000000e+00 : f32
    %4 = vector.broadcast %cst : f32 to vector<128x256xf32>
    %5 = vector.broadcast %cst_1 : f32 to vector<128x256xf32>
    %6 = arith.select %3, %4, %5 : vector<128x256xi1>, vector<128x256xf32>
    %7 = arith.truncf %6 : vector<128x256xf32> to vector<128x256xbf16>
    %c0_2 = arith.constant 0 : index
    %c0_3 = arith.constant 0 : index
    %8 = vector.load %arg2[%c0_2, %c0_3] : memref<1x256xi32, #tpu.memory_space<vmem>>, vector<1x256xi32>
    %9 = vector.broadcast %8 : vector<1x256xi32> to vector<128x256xi32>
    %10 = arith.cmpi eq, %0, %9 : vector<128x256xi32>
    %cst_4 = arith.constant 1.000000e+00 : f32
    %cst_5 = arith.constant 0.000000e+00 : f32
    %11 = vector.broadcast %cst_4 : f32 to vector<128x256xf32>
    %12 = vector.broadcast %cst_5 : f32 to vector<128x256xf32>
    %13 = arith.select %10, %11, %12 : vector<128x256xi1>, vector<128x256xf32>
    %14 = arith.truncf %13 : vector<128x256xf32> to vector<128x256xbf16>
    %c0_6 = arith.constant 0 : index
    %c0_7 = arith.constant 0 : index
    %15 = vector.load %arg3[%c0_6, %c0_7] : memref<128x128xbf16, #tpu.memory_space<vmem>>, vector<128x128xbf16>
    %cst_8 = arith.constant dense<0.000000e+00> : vector<128x256xf32>
    %16 = tpu.matmul %15, %7, %cst_8 {dimension_numbers = #tpu.dot_dimension_numbers<[1], [0], [0], [1], [0, 0, 1, 1], [], []>} : vector<128x128xbf16>, vector<128x256xbf16>, vector<128x256xf32> -> vector<128x256xf32>
    %cst_9 = arith.constant dense<0.000000e+00> : vector<128x256xf32>
    %17 = tpu.matmul %15, %14, %cst_9 {dimension_numbers = #tpu.dot_dimension_numbers<[1], [0], [0], [1], [0, 0, 1, 1], [], []>} : vector<128x128xbf16>, vector<128x256xbf16>, vector<128x256xf32> -> vector<128x256xf32>
    %18 = arith.mulf %16, %17 : vector<128x256xf32>
    %19 = arith.truncf %18 : vector<128x256xf32> to vector<128x256xbf16>
    %c0_10 = arith.constant 0 : index
    %c0_11 = arith.constant 0 : index
    %20 = vector.load %arg4[%c0_10, %c0_11] : memref<32x128xbf16, #tpu.memory_space<vmem>>, vector<32x128xbf16>
    %cst_12 = arith.constant dense<0.000000e+00> : vector<32x256xf32>
    %21 = tpu.matmul %20, %19, %cst_12 {dimension_numbers = #tpu.dot_dimension_numbers<[1], [0], [0], [1], [0, 0, 1, 1], [], []>} : vector<32x128xbf16>, vector<128x256xbf16>, vector<32x256xf32> -> vector<32x256xf32>
    %cst_13 = arith.constant 0.000000e+00 : f32
    %22 = vector.broadcast %cst_13 : f32 to vector<32x256xf32>
    %23 = arith.maximumf %21, %22 : vector<32x256xf32>
    %c0_14 = arith.constant 0 : index
    %c0_15 = arith.constant 0 : index
    %24 = vector.load %arg5[%c0_14, %c0_15] : memref<32x32xf32, #tpu.memory_space<vmem>>, vector<32x32xf32>
    %cst_16 = arith.constant dense<0.000000e+00> : vector<32x256xf32>
    %25 = tpu.matmul %24, %23, %cst_16 {dimension_numbers = #tpu.dot_dimension_numbers<[1], [0], [0], [1], [0, 0, 1, 1], [], []>} : vector<32x32xf32>, vector<32x256xf32>, vector<32x256xf32> -> vector<32x256xf32>
    %c0_17 = arith.constant 0 : index
    %c0_18 = arith.constant 0 : index
    %26 = vector.load %arg6[%c0_17, %c0_18] : memref<32x1xf32, #tpu.memory_space<vmem>>, vector<32x1xf32>
    %27 = vector.broadcast %26 : vector<32x1xf32> to vector<32x256xf32>
    %28 = arith.addf %25, %27 : vector<32x256xf32>
    %cst_19 = arith.constant 0.000000e+00 : f32
    %29 = vector.broadcast %cst_19 : f32 to vector<32x256xf32>
    %30 = arith.maximumf %28, %29 : vector<32x256xf32>
    %c0_20 = arith.constant 0 : index
    %c0_21 = arith.constant 0 : index
    %31 = vector.load %arg7[%c0_20, %c0_21] : memref<32x32xf32, #tpu.memory_space<vmem>>, vector<32x32xf32>
    %cst_22 = arith.constant dense<0.000000e+00> : vector<32x256xf32>
    %32 = tpu.matmul %31, %30, %cst_22 {dimension_numbers = #tpu.dot_dimension_numbers<[1], [0], [0], [1], [0, 0, 1, 1], [], []>} : vector<32x32xf32>, vector<32x256xf32>, vector<32x256xf32> -> vector<32x256xf32>
    %c0_23 = arith.constant 0 : index
    %c0_24 = arith.constant 0 : index
    %33 = vector.load %arg8[%c0_23, %c0_24] : memref<32x1xf32, #tpu.memory_space<vmem>>, vector<32x1xf32>
    %34 = vector.broadcast %33 : vector<32x1xf32> to vector<32x256xf32>
    %35 = arith.addf %32, %34 : vector<32x256xf32>
    %cst_25 = arith.constant 0.000000e+00 : f32
    %36 = vector.broadcast %cst_25 : f32 to vector<32x256xf32>
    %37 = arith.maximumf %35, %36 : vector<32x256xf32>
    %c0_26 = arith.constant 0 : index
    %c0_27 = arith.constant 0 : index
    %38 = vector.load %arg9[%c0_26, %c0_27] : memref<1x32xf32, #tpu.memory_space<vmem>>, vector<1x32xf32>
    %cst_28 = arith.constant dense<0.000000e+00> : vector<1x256xf32>
    %39 = tpu.matmul %38, %37, %cst_28 {dimension_numbers = #tpu.dot_dimension_numbers<[1], [0], [0], [1], [0, 0, 1, 1], [], []>} : vector<1x32xf32>, vector<32x256xf32>, vector<1x256xf32> -> vector<1x256xf32>
    %c0_29 = arith.constant 0 : index
    %c0_30 = arith.constant 0 : index
    %40 = vector.load %arg10[%c0_29, %c0_30] : memref<1x1xf32, #tpu.memory_space<vmem>>, vector<1x1xf32>
    %41 = vector.broadcast %40 : vector<1x1xf32> to vector<1x256xf32>
    %42 = arith.addf %39, %41 : vector<1x256xf32>
    %43 = arith.negf %42 : vector<1x256xf32>
    %44 = math.exp %43 : vector<1x256xf32>
    %cst_31 = arith.constant 1.000000e+00 : f32
    %45 = vector.broadcast %cst_31 : f32 to vector<1x256xf32>
    %46 = arith.addf %45, %44 : vector<1x256xf32>
    %47 = arith.divf %45, %46 : vector<1x256xf32>
    %c0_32 = arith.constant 0 : index
    %c0_33 = arith.constant 0 : index
    %48 = vector.load %arg11[%c0_32, %c0_33] : memref<1x256xf32, #tpu.memory_space<vmem>>, vector<1x256xf32>
    tpu.vector_store %arg11[%c0_32, %c0_33], %47 {strides = array<i32>} : memref<1x256xf32, #tpu.memory_space<vmem>>, vector<1x256xf32>,
    return
  }
  func.func @transform_0(%arg0: i32) -> (i32, i32) {
    %c0_i32 = arith.constant 0 : i32
    %c0_i32_0 = arith.constant 0 : i32
    return %c0_i32, %arg0 : i32, i32
  }
  func.func @transform_1(%arg0: i32) -> (i32, i32) {
    %c0_i32 = arith.constant 0 : i32
    %c0_i32_0 = arith.constant 0 : i32
    return %c0_i32, %arg0 : i32, i32
  }
  func.func @transform_2(%arg0: i32) -> (i32, i32) {
    %c0_i32 = arith.constant 0 : i32
    %c0_i32_0 = arith.constant 0 : i32
    %c0_i32_1 = arith.constant 0 : i32
    return %c0_i32, %c0_i32_0 : i32, i32
  }
  func.func @transform_3(%arg0: i32) -> (i32, i32) {
    %c0_i32 = arith.constant 0 : i32
    %c0_i32_0 = arith.constant 0 : i32
    %c0_i32_1 = arith.constant 0 : i32
    return %c0_i32, %c0_i32_0 : i32, i32
  }
  func.func @transform_4(%arg0: i32) -> (i32, i32) {
    %c0_i32 = arith.constant 0 : i32
    %c0_i32_0 = arith.constant 0 : i32
    %c0_i32_1 = arith.constant 0 : i32
    return %c0_i32, %c0_i32_0 : i32, i32
  }
  func.func @transform_5(%arg0: i32) -> (i32, i32) {
    %c0_i32 = arith.constant 0 : i32
    %c0_i32_0 = arith.constant 0 : i32
    %c0_i32_1 = arith.constant 0 : i32
    return %c0_i32, %c0_i32_0 : i32, i32
  }
  func.func @transform_6(%arg0: i32) -> (i32, i32) {
    %c0_i32 = arith.constant 0 : i32
    %c0_i32_0 = arith.constant 0 : i32
    %c0_i32_1 = arith.constant 0 : i32
    return %c0_i32, %c0_i32_0 : i32, i32
  }
  func.func @transform_7(%arg0: i32) -> (i32, i32) {
    %c0_i32 = arith.constant 0 : i32
    %c0_i32_0 = arith.constant 0 : i32
    %c0_i32_1 = arith.constant 0 : i32
    return %c0_i32, %c0_i32_0 : i32, i32
  }
  func.func @transform_8(%arg0: i32) -> (i32, i32) {
    %c0_i32 = arith.constant 0 : i32
    %c0_i32_0 = arith.constant 0 : i32
    %c0_i32_1 = arith.constant 0 : i32
    return %c0_i32, %c0_i32_0 : i32, i32
  }
  func.func @transform_9(%arg0: i32) -> (i32, i32) {
    %c0_i32 = arith.constant 0 : i32
    %c0_i32_0 = arith.constant 0 : i32
    %c0_i32_1 = arith.constant 0 : i32
    return %c0_i32, %c0_i32_0 : i32, i32
  }
  func.func @transform_10(%arg0: i32) -> (i32, i32) {
    %c0_i32 = arith.constant 0 : i32
    %c0_i32_0 = arith.constant 0 : i32
    return %c0_i32, %arg0 : i32, i32
  }
}

</mosaic_0001>

<bundles_post_ra>
// kernel: mlp_polynomial_features.1
= control target key start
LH: loop header
LB: loop body
LE: loop exit
PB: predicated region body
PF: predicated region fallthrough
CT: control target
= control target key end

     0   :  { %s1550_s15 = smov 0   ;;  %s1839_s0 = inlined_call_operand.vmem [shape: s32[1,512], index: 0, kind: input, shape index: {}]   ;;  %s1840_s1 = inlined_call_operand.vmem [shape: s32[1,512], index: 1, kind: input, shape index: {}]   ;;  %s1841_s2 = inlined_call_operand.vmem [shape: bf16[128,128], index: 2, kind: input, shape index: {}]   ;;  %s1842_s3 = inlined_call_operand.vmem [shape: bf16[32,128], index: 3, kind: input, shape index: {}]   ;;  %s1843_s4 = inlined_call_operand.vmem [shape: f32[32,32], index: 4, kind: input, shape index: {}]   ;;  %s1844_s5 = inlined_call_operand.vmem [shape: f32[32,1], index: 5, kind: input, shape index: {}]   ;;  %s1845_s6 = inlined_call_operand.vmem [shape: f32[32,32], index: 6, kind: input, shape index: {}]   ;;  %s1846_s7 = inlined_call_operand.vmem [shape: f32[32,1], index: 7, kind: input, shape index: {}]   ;;  %s1847_s8 = inlined_call_operand.vmem [shape: f32[1,32], index: 8, kind: input, shape index: {}]   ;;  %s1848_s9 = inlined_call_operand.<no memory space> [shape: f32[1,1], index: 9, kind: input, shape index: {}]   ;;  %s1849_s10 = inlined_call_operand.vmem [shape: f32[1,512], index: 10, kind: output, shape index: {}]  }
   0x1   :  { %v15_v0 = vstv %s1848_s9 }
   0x2   :  { %16 = vst [vmem:[#allocation2] sm:$0x1] %v15_v0 }
   0x3 LB: > { %s1301_s16 = sadd.s32 4294967295, %s1488_s15   ;;  %p1305_p0 = scmp.ge.s32.totalorder %s1488_s15, 1  ;;  %s1488_s15 = sphi %s1550_s15, %s22_s15  }
   0x4   : > { %p324_p1 = scmp.lt.s32.totalorder %s1488_s15, 3 }
   0x6   : > { %p325_p2 = pnand %p1305_p0, %p324_p1 }
   0x7   : > { %s1306_s17 = sshll.u32 (!%p325_p2), %s1301_s16, 1 }
   0x8   : > { %328 = sbr.rel (%p325_p2) target bundleno = 985 (0x3d9), region = 60  ;;  %p365_p3 = scmp.lt.s32.totalorder (!%p325_p2), %s1306_s17, 3 }
   0xd   : > { %v379_v1 = vlaneseq  ;;  %s1853_s17 = smov (!%p365_p3, %s1306_s17), 3  ;;  %v1490_v13 = vmov 1.0|1.0   ;;  %v1435_v25 = vld [vmem:[%s1841_s2] sm:$0xff]  ;;  %v1436_v26 = vld [vmem:[%s1841_s2 + $0x8] sm:$0xff]  ;;  %v1437_v27 = vld [vmem:[%s1841_s2 + $0x10] sm:$0xff] }
   0xe   : > { %s367_s19 = scalar_lea.vmem %s1839_s0, %s1853_s17  ;;  %s372_s22 = scalar_lea.vmem %s1840_s1, %s1853_s17  ;;  %v1438_v28 = vld [vmem:[%s1841_s2 + $0x18] sm:$0xff]  ;;  %v1439_v29 = vld [vmem:[%s1841_s2 + $0x20] sm:$0xff]  ;;  %v1440_v30 = vld [vmem:[%s1841_s2 + $0x28] sm:$0xff] }
   0xf   : > { %v1559_v2 = vshrl.u32 %v379_v1, 7  ;;  %v396_v5 = vld [vmem:[%s367_s19] sm:$0x3]  ;;  %v1441_v31 = vld [vmem:[%s1841_s2 + $0x30] sm:$0xff]  ;;  %v1442_v32 = vld [vmem:[%s1841_s2 + $0x38] sm:$0xff] }
  0x10   : > { %v479_v6 = vld [vmem:[%s372_s22] sm:$0x3]  ;;  %v1575_v9 = vperm.slane %v396_v5, 0  ;;  %v1577_v10 = vperm.slane %v396_v5, 1  ;;  %s377_s22 = scalar_lea.vmem %s1849_s10, %s1853_s17 }
  0x11   : > { %v394_v3 = vadd.s32 112, %v1559_v2  ;;  %v395_v4 = vadd.s32 120, %v1559_v2  ;;  %v392_v7 = vadd.s32 96, %v1559_v2  ;;  %v393_v8 = vadd.s32 104, %v1559_v2 }
  0x12   : > { %v1579_v11 = vperm.slane %v479_v6, 0  ;;  %v1581_v12 = vperm.slane %v479_v6, 1  ;;  %v390_v14 = vadd.s32 80, %v1559_v2  ;;  %v391_v15 = vadd.s32 88, %v1559_v2 }
  0x13   : > { %vm427_vm0 = vcmp.eq.s32.totalorder %v394_v3, %v1575_v9  ;;  %vm429_vm1 = vcmp.eq.s32.totalorder %v395_v4, %v1575_v9  ;;  %vm428_vm2 = vcmp.eq.s32.totalorder %v394_v3, %v1577_v10  ;;  %vm430_vm3 = vcmp.eq.s32.totalorder %v395_v4, %v1577_v10 }
  0x14   : > { %vm1341_vm4 = vmpackc.low %vm429_vm1, %vm427_vm0  ;;  %vm510_vm5 = vcmp.eq.s32.totalorder %v394_v3, %v1579_v11  ;;  %vm512_vm6 = vcmp.eq.s32.totalorder %v395_v4, %v1579_v11  ;;  %vm511_vm7 = vcmp.eq.s32.totalorder %v394_v3, %v1581_v12  ;;  %vm513_vm8 = vcmp.eq.s32.totalorder %v395_v4, %v1581_v12 }
  0x15   : > { %1342 = vmatpush.bf16.msk.msra.mxu0 %vm1341_vm4, %v1490_v13  ;;  %vm1357_vm9 = vmpackc.low %vm430_vm3, %vm428_vm2  ;;  %vm423_vm10 = vcmp.eq.s32.totalorder %v392_v7, %v1575_v9  ;;  %vm425_vm11 = vcmp.eq.s32.totalorder %v393_v8, %v1575_v9  ;;  %vm424_vm13 = vcmp.eq.s32.totalorder %v392_v7, %v1577_v10  ;;  %vm426_vm14 = vcmp.eq.s32.totalorder %v393_v8, %v1577_v10 }
  0x16   : > { %1358 = vmatpush.bf16.msk.msra.mxu1 %vm1357_vm9, %v1490_v13  ;;  %vm1373_vm12 = vmpackc.low %vm512_vm6, %vm510_vm5  ;;  %vm506_vm0 = vcmp.eq.s32.totalorder %v392_v7, %v1579_v11  ;;  %vm508_vm1 = vcmp.eq.s32.totalorder %v393_v8, %v1579_v11  ;;  %vm507_vm3 = vcmp.eq.s32.totalorder %v392_v7, %v1581_v12  ;;  %vm509_vm4 = vcmp.eq.s32.totalorder %v393_v8, %v1581_v12 }
  0x17   : > { %1374 = vmatpush.bf16.msk.msra.mxu2 %vm1373_vm12, %v1490_v13  ;;  %vm1389_vm15 = vmpackc.low %vm513_vm8, %vm511_vm7  ;;  %vm419_vm6 = vcmp.eq.s32.totalorder %v390_v14, %v1575_v9  ;;  %vm421_vm9 = vcmp.eq.s32.totalorder %v391_v15, %v1575_v9  ;;  %v388_v16 = vadd.s32 64, %v1559_v2  ;;  %v389_v17 = vadd.s32 72, %v1559_v2 }
  0x18   : > { %1390 = vmatpush.bf16.msk.msra.mxu3 %vm1389_vm15, %v1490_v13  ;;  %vm1343_vm2 = vmpackc.low %vm425_vm11, %vm423_vm10  ;;  %vm420_vm8 = vcmp.eq.s32.totalorder %v390_v14, %v1577_v10  ;;  %vm422_vm10 = vcmp.eq.s32.totalorder %v391_v15, %v1577_v10  ;;  %vm502_vm12 = vcmp.eq.s32.totalorder %v390_v14, %v1579_v11  ;;  %vm503_vm15 = vcmp.eq.s32.totalorder %v390_v14, %v1581_v12 }
  0x19   : > { %1344 = vmatpush.bf16.msk.msra.mxu0 %vm1343_vm2, %v1490_v13  ;;  %vm1359_vm5 = vmpackc.low %vm426_vm14, %vm424_vm13  ;;  %vm504_vm13 = vcmp.eq.s32.totalorder %v391_v15, %v1579_v11  ;;  %vm505_vm2 = vcmp.eq.s32.totalorder %v391_v15, %v1581_v12  ;;  %v386_v18 = vadd.s32 48, %v1559_v2  ;;  %v387_v19 = vadd.s32 56, %v1559_v2 }
  0x1a   : > { %1360 = vmatpush.bf16.msk.msra.mxu1 %vm1359_vm5, %v1490_v13  ;;  %vm1375_vm7 = vmpackc.low %vm508_vm1, %vm506_vm0  ;;  %vm415_vm1 = vcmp.eq.s32.totalorder %v388_v16, %v1575_v9  ;;  %vm417_vm5 = vcmp.eq.s32.totalorder %v389_v17, %v1575_v9  ;;  %v384_v20 = vadd.s32 32, %v1559_v2  ;;  %v385_v21 = vadd.s32 40, %v1559_v2 }
  0x1b   : > { %1376 = vmatpush.bf16.msk.msra.mxu2 %vm1375_vm7, %v1490_v13  ;;  %vm1391_vm11 = vmpackc.low %vm509_vm4, %vm507_vm3  ;;  %vm416_vm4 = vcmp.eq.s32.totalorder %v388_v16, %v1577_v10  ;;  %vm498_vm7 = vcmp.eq.s32.totalorder %v388_v16, %v1579_v11  ;;  %v382_v22 = vadd.s32 16, %v1559_v2  ;;  %v383_v23 = vadd.s32 24, %v1559_v2 }
  0x1c   : > { %1392 = vmatpush.bf16.msk.msra.mxu3 %vm1391_vm11, %v1490_v13  ;;  %vm1345_vm14 = vmpackc.low %vm421_vm9, %vm419_vm6  ;;  %vm418_vm6 = vcmp.eq.s32.totalorder %v389_v17, %v1577_v10  ;;  %vm499_vm11 = vcmp.eq.s32.totalorder %v388_v16, %v1581_v12  ;;  %v381_v24 = vadd.s32 8, %v1559_v2 }
  0x1d   : > { %1346 = vmatpush.bf16.msk.msra.mxu0 %vm1345_vm14, %v1490_v13  ;;  %vm1361_vm0 = vmpackc.low %vm422_vm10, %vm420_vm8  ;;  %vm500_vm8 = vcmp.eq.s32.totalorder %v389_v17, %v1579_v11  ;;  %vm501_vm14 = vcmp.eq.s32.totalorder %v389_v17, %v1581_v12 }
  0x1e   : > { %1362 = vmatpush.bf16.msk.msra.mxu1 %vm1361_vm0, %v1490_v13  ;;  %vm1377_vm3 = vmpackc.low %vm504_vm13, %vm502_vm12  ;;  %vm411_vm13 = vcmp.eq.s32.totalorder %v386_v18, %v1575_v9  ;;  %vm413_vm0 = vcmp.eq.s32.totalorder %v387_v19, %v1575_v9 }
  0x1f   : > { %1378 = vmatpush.bf16.msk.msra.mxu2 %vm1377_vm3, %v1490_v13  ;;  %vm1393_vm9 = vmpackc.low %vm505_vm2, %vm503_vm15  ;;  %vm412_vm2 = vcmp.eq.s32.totalorder %v386_v18, %v1577_v10  ;;  %vm494_vm3 = vcmp.eq.s32.totalorder %v386_v18, %v1579_v11 }
  0x20   : > { %1394 = vmatpush.bf16.msk.msra.mxu3 %vm1393_vm9, %v1490_v13  ;;  %vm1347_vm10 = vmpackc.low %vm417_vm5, %vm415_vm1  ;;  %vm414_vm1 = vcmp.eq.s32.totalorder %v387_v19, %v1577_v10  ;;  %vm495_vm9 = vcmp.eq.s32.totalorder %v386_v18, %v1581_v12 }
  0x21   : > { %1348 = vmatpush.bf16.msk.msra.mxu0 %vm1347_vm10, %v1490_v13  ;;  %vm1363_vm12 = vmpackc.low %vm418_vm6, %vm416_vm4  ;;  %vm496_vm4 = vcmp.eq.s32.totalorder %v387_v19, %v1579_v11  ;;  %vm497_vm10 = vcmp.eq.s32.totalorder %v387_v19, %v1581_v12 }
  0x22   : > { %1364 = vmatpush.bf16.msk.msra.mxu1 %vm1363_vm12, %v1490_v13  ;;  %vm1379_vm15 = vmpackc.low %vm500_vm8, %vm498_vm7  ;;  %vm407_vm8 = vcmp.eq.s32.totalorder %v384_v20, %v1575_v9  ;;  %vm409_vm12 = vcmp.eq.s32.totalorder %v385_v21, %v1575_v9 }
  0x23   : > { %1380 = vmatpush.bf16.msk.msra.mxu2 %vm1379_vm15, %v1490_v13  ;;  %vm1395_vm5 = vmpackc.low %vm501_vm14, %vm499_vm11  ;;  %vm408_vm14 = vcmp.eq.s32.totalorder %v384_v20, %v1577_v10  ;;  %vm490_vm15 = vcmp.eq.s32.totalorder %v384_v20, %v1579_v11 }
  0x24   : > { %1396 = vmatpush.bf16.msk.msra.mxu3 %vm1395_vm5, %v1490_v13  ;;  %vm1349_vm6 = vmpackc.low %vm413_vm0, %vm411_vm13  ;;  %vm410_vm13 = vcmp.eq.s32.totalorder %v385_v21, %v1577_v10  ;;  %vm491_vm5 = vcmp.eq.s32.totalorder %v384_v20, %v1581_v12 }
  0x25   : > { %1350 = vmatpush.bf16.msk.msra.mxu0 %vm1349_vm6, %v1490_v13  ;;  %vm1365_vm7 = vmpackc.low %vm414_vm1, %vm412_vm2  ;;  %vm492_vm2 = vcmp.eq.s32.totalorder %v385_v21, %v1579_v11  ;;  %vm493_vm6 = vcmp.eq.s32.totalorder %v385_v21, %v1581_v12 }
  0x26   : > { %1366 = vmatpush.bf16.msk.msra.mxu1 %vm1365_vm7, %v1490_v13  ;;  %vm1381_vm11 = vmpackc.low %vm496_vm4, %vm494_vm3  ;;  %vm403_vm4 = vcmp.eq.s32.totalorder %v382_v22, %v1575_v9  ;;  %vm405_vm7 = vcmp.eq.s32.totalorder %v383_v23, %v1575_v9 }
  0x27   : > { %1382 = vmatpush.bf16.msk.msra.mxu2 %vm1381_vm11, %v1490_v13  ;;  %vm1397_vm0 = vmpackc.low %vm497_vm10, %vm495_vm9  ;;  %vm404_vm10 = vcmp.eq.s32.totalorder %v382_v22, %v1577_v10  ;;  %vm486_vm11 = vcmp.eq.s32.totalorder %v382_v22, %v1579_v11 }
  0x28   : > { %1398 = vmatpush.bf16.msk.msra.mxu3 %vm1397_vm0, %v1490_v13  ;;  %vm1351_vm1 = vmpackc.low %vm409_vm12, %vm407_vm8  ;;  %vm406_vm8 = vcmp.eq.s32.totalorder %v383_v23, %v1577_v10  ;;  %vm487_vm0 = vcmp.eq.s32.totalorder %v382_v22, %v1581_v12 }
  0x29   : > { %1352 = vmatpush.bf16.msk.msra.mxu0 %vm1351_vm1, %v1490_v13  ;;  %vm1367_vm3 = vmpackc.low %vm410_vm13, %vm408_vm14  ;;  %vm488_vm14 = vcmp.eq.s32.totalorder %v383_v23, %v1579_v11  ;;  %vm489_vm1 = vcmp.eq.s32.totalorder %v383_v23, %v1581_v12 }
  0x2a   : > { %1368 = vmatpush.bf16.msk.msra.mxu1 %vm1367_vm3, %v1490_v13  ;;  %vm1383_vm9 = vmpackc.low %vm492_vm2, %vm490_vm15  ;;  %vm399_vm2 = vcmp.eq.s32.totalorder %v1559_v2, %v1575_v9  ;;  %vm401_vm3 = vcmp.eq.s32.totalorder %v381_v24, %v1575_v9 }
  0x2b   : > { %1384 = vmatpush.bf16.msk.msra.mxu2 %vm1383_vm9, %v1490_v13  ;;  %vm1399_vm12 = vmpackc.low %vm493_vm6, %vm491_vm5  ;;  %vm400_vm6 = vcmp.eq.s32.totalorder %v1559_v2, %v1577_v10  ;;  %vm482_vm9 = vcmp.eq.s32.totalorder %v1559_v2, %v1579_v11 }
  0x2c   : > { %1400 = vmatpush.bf16.msk.msra.mxu3 %vm1399_vm12, %v1490_v13  ;;  %vm1353_vm13 = vmpackc.low %vm405_vm7, %vm403_vm4  ;;  %vm402_vm4 = vcmp.eq.s32.totalorder %v381_v24, %v1577_v10  ;;  %vm483_vm12 = vcmp.eq.s32.totalorder %v1559_v2, %v1581_v12 }
  0x2d   : > { %1354 = vmatpush.bf16.msk.msra.mxu0 %vm1353_vm13, %v1490_v13  ;;  %vm1369_vm15 = vmpackc.low %vm406_vm8, %vm404_vm10  ;;  %vm484_vm10 = vcmp.eq.s32.totalorder %v381_v24, %v1579_v11 }
  0x2e   : > { %1370 = vmatpush.bf16.msk.msra.mxu1 %vm1369_vm15, %v1490_v13  ;;  %vm1385_vm5 = vmpackc.low %vm488_vm14, %vm486_vm11  ;;  %vm485_vm11 = vcmp.eq.s32.totalorder %v381_v24, %v1581_v12 }
  0x2f   : > { %1386 = vmatpush.bf16.msk.msra.mxu2 %vm1385_vm5, %v1490_v13  ;;  %vm1401_vm7 = vmpackc.low %vm489_vm1, %vm487_vm0  ;;  %vm960_vm1 = vcmask 261120  }
  0x30   : > { %1402 = vmatpush.bf16.msk.msra.mxu3 %vm1401_vm7, %v1490_v13  ;;  %vm1355_vm8 = vmpackc.low %vm401_vm3, %vm399_vm2 }
  0x31   : > { %1356 = vmatpush.bf16.msk.msra.mxu0 %vm1355_vm8, %v1490_v13  ;;  %vm1371_vm14 = vmpackc.low %vm402_vm4, %vm400_vm6  ;;  %vm1242_vm8 = vcmp.lt.s32.totalorder %v379_v1, 256 }
  0x32   : > { %1372 = vmatpush.bf16.msk.msra.mxu1 %vm1371_vm14, %v1490_v13  ;;  %vm1387_vm13 = vmpackc.low %vm484_vm10, %vm482_vm9  ;;  %vm1237_vm9 = vcmask 1040384  }
  0x33   : > { %1388 = vmatpush.bf16.msk.msra.mxu2 %vm1387_vm13, %v1490_v13  ;;  %vm1403_vm0 = vmpackc.low %vm485_vm11, %vm483_vm12 }
  0x34   : > { %1404 = vmatpush.bf16.msk.msra.mxu3 %vm1403_vm0, %v1490_v13  ;;  %634 = vmatmul.bf16.vlgmr.msra.gmra.mxu0 %v1435_v25 }
  0x35   : > { %683 = vmatmul.bf16.vlgmr.msra.gmra.mxu1 %v1435_v25 }
  0x36   : > { %732 = vmatmul.bf16.vlgmr.msra.gmra.mxu2 %v1435_v25 }
  0x37   : > { %781 = vmatmul.bf16.vlgmr.msra.gmra.mxu3 %v1435_v25 }
  0x44   : > { %639 = vmatmul.bf16.gmra.mxu0 %v1436_v26 }
  0x45   : > { %688 = vmatmul.bf16.gmra.mxu1 %v1436_v26 }
  0x46   : > { %737 = vmatmul.bf16.gmra.mxu2 %v1436_v26 }
  0x47   : > { %786 = vmatmul.bf16.gmra.mxu3 %v1436_v26 }
  0x54   : > { %644 = vmatmul.bf16.gmra.mxu0 %v1437_v27 }
  0x55   : > { %693 = vmatmul.bf16.gmra.mxu1 %v1437_v27 }
  0x56   : > { %742 = vmatmul.bf16.gmra.mxu2 %v1437_v27 }
  0x57   : > { %791 = vmatmul.bf16.gmra.mxu3 %v1437_v27 }
  0x64   : > { %649 = vmatmul.bf16.gmra.mxu0 %v1438_v28 }
  0x65   : > { %698 = vmatmul.bf16.gmra.mxu1 %v1438_v28 }
  0x66   : > { %747 = vmatmul.bf16.gmra.mxu2 %v1438_v28 }
  0x67   : > { %796 = vmatmul.bf16.gmra.mxu3 %v1438_v28 }
  0x74   : > { %654 = vmatmul.bf16.gmra.mxu0 %v1439_v29 }
  0x75   : > { %703 = vmatmul.bf16.gmra.mxu1 %v1439_v29 }
  0x76   : > { %752 = vmatmul.bf16.gmra.mxu2 %v1439_v29 }
  0x77   : > { %801 = vmatmul.bf16.gmra.mxu3 %v1439_v29 }
  0x84   : > { %659 = vmatmul.bf16.gmra.mxu0 %v1440_v30 }
  0x85   : > { %708 = vmatmul.bf16.gmra.mxu1 %v1440_v30 }
  0x86   : > { %757 = vmatmul.bf16.gmra.mxu2 %v1440_v30 }
  0x87   : > { %806 = vmatmul.bf16.gmra.mxu3 %v1440_v30 }
  0x94   : > { %664 = vmatmul.bf16.gmra.mxu0 %v1441_v31 }
  0x95   : > { %713 = vmatmul.bf16.gmra.mxu1 %v1441_v31 }
  0x96   : > { %762 = vmatmul.bf16.gmra.mxu2 %v1441_v31 }
  0x97   : > { %811 = vmatmul.bf16.gmra.mxu3 %v1441_v31 }
  0xa4   : > { %669 = vmatmul.bf16.gmra.mxu0 %v1442_v32 }
  0xa5   : > { %718 = vmatmul.bf16.gmra.mxu1 %v1442_v32 }
  0xa6   : > { %767 = vmatmul.bf16.gmra.mxu2 %v1442_v32 }
  0xa7   : > { %816 = vmatmul.bf16.gmra.mxu3 %v1442_v32 }
  0xb1   : > { %v635_v33 = vpop.f32.mrf.mxu0 }
  0xb2   : > { %v684_v34 = vpop.f32.mrf.mxu1 }
  0xb9   : > { %v733_v35 = vpop.f32.mrf.mxu2  ;;  %v637_v36 = vpop.f32.mrf.mxu0 }
  0xba   : > { %v822_v37 = vmul.f32 %v733_v35, %v635_v33  ;;  %v782_v38 = vpop.f32.mrf.mxu3  ;;  %v686_v39 = vpop.f32.mrf.mxu1 }
  0xbb   : > { %v823_v40 = vmul.f32 %v782_v38, %v684_v34 }
  0xc1   : > { %v735_v41 = vpop.f32.mrf.mxu2  ;;  %v640_v42 = vpop.f32.mrf.mxu0 }
  0xc2   : > { %v824_v43 = vmul.f32 %v735_v41, %v637_v36  ;;  %v784_v44 = vpop.f32.mrf.mxu3  ;;  %v689_v45 = vpop.f32.mrf.mxu1 }
  0xc3   : > { %v825_v46 = vmul.f32 %v784_v44, %v686_v39 }
  0xc4   : > { %v1718_v47 = vpack.c.bf16 %v824_v43, %v822_v37 }
  0xc5   : > { %v1720_v48 = vpack.c.bf16 %v825_v46, %v823_v40 }
  0xc9   : > { %v738_v49 = vpop.f32.mrf.mxu2  ;;  %v642_v50 = vpop.f32.mrf.mxu0 }
  0xca   : > { %v826_v51 = vmul.f32 %v738_v49, %v640_v42  ;;  %v787_v52 = vpop.f32.mrf.mxu3  ;;  %v691_v53 = vpop.f32.mrf.mxu1 }
  0xcb   : > { %v827_v54 = vmul.f32 %v787_v52, %v689_v45 }
  0xd1   : > { %v740_v55 = vpop.f32.mrf.mxu2  ;;  %v645_v56 = vpop.f32.mrf.mxu0 }
  0xd2   : > { %v828_v57 = vmul.f32 %v740_v55, %v642_v50  ;;  %v789_v58 = vpop.f32.mrf.mxu3  ;;  %v694_v59 = vpop.f32.mrf.mxu1 }
  0xd3   : > { %v829_v60 = vmul.f32 %v789_v58, %v691_v53 }
  0xd4   : > { %v1722_v61 = vpack.c.bf16 %v828_v57, %v826_v51 }
  0xd5   : > { %v1724_v62 = vpack.c.bf16 %v829_v60, %v827_v54 }
  0xd9   : > { %v743_v63 = vpop.f32.mrf.mxu2  ;;  %v647_v0 = vpop.f32.mrf.mxu0 }
  0xda   : > { %v830_v2 = vmul.f32 %v743_v63, %v645_v56  ;;  %v792_v3 = vpop.f32.mrf.mxu3  ;;  %v696_v4 = vpop.f32.mrf.mxu1 }
  0xdb   : > { %v831_v5 = vmul.f32 %v792_v3, %v694_v59 }
  0xe1   : > { %v745_v6 = vpop.f32.mrf.mxu2  ;;  %v650_v7 = vpop.f32.mrf.mxu0 }
  0xe2   : > { %v832_v8 = vmul.f32 %v745_v6, %v647_v0  ;;  %v794_v9 = vpop.f32.mrf.mxu3  ;;  %v699_v10 = vpop.f32.mrf.mxu1 }
  0xe3   : > { %v833_v11 = vmul.f32 %v794_v9, %v696_v4 }
  0xe4   : > { %v1726_v12 = vpack.c.bf16 %v832_v8, %v830_v2 }
  0xe5   : > { %v1728_v13 = vpack.c.bf16 %v833_v11, %v831_v5 }
  0xe9   : > { %v748_v14 = vpop.f32.mrf.mxu2  ;;  %v652_v15 = vpop.f32.mrf.mxu0 }
  0xea   : > { %v834_v16 = vmul.f32 %v748_v14, %v650_v7  ;;  %v797_v17 = vpop.f32.mrf.mxu3  ;;  %v701_v18 = vpop.f32.mrf.mxu1 }
  0xeb   : > { %v835_v19 = vmul.f32 %v797_v17, %v699_v10 }
  0xf1   : > { %v750_v20 = vpop.f32.mrf.mxu2  ;;  %v655_v21 = vpop.f32.mrf.mxu0 }
  0xf2   : > { %v836_v22 = vmul.f32 %v750_v20, %v652_v15  ;;  %v799_v23 = vpop.f32.mrf.mxu3  ;;  %v704_v24 = vpop.f32.mrf.mxu1 }
  0xf3   : > { %v837_v25 = vmul.f32 %v799_v23, %v701_v18 }
  0xf4   : > { %v1730_v26 = vpack.c.bf16 %v836_v22, %v834_v16 }
  0xf5   : > { %v1732_v27 = vpack.c.bf16 %v837_v25, %v835_v19  ;;  %v1444_v25 = vld [vmem:[%s1842_s3 + $0x8] sm:$0xff] }
  0xf9   : > { %v753_v28 = vpop.f32.mrf.mxu2  ;;  %v657_v29 = vpop.f32.mrf.mxu0 }
  0xfa   : > { %v838_v30 = vmul.f32 %v753_v28, %v655_v21  ;;  %v802_v31 = vpop.f32.mrf.mxu3  ;;  %v706_v32 = vpop.f32.mrf.mxu1  ;;  %v939_v28 = vld [vmem:[%s1844_s5 + $0x18] sm:$0xff] }
  0xfb   : > { %v839_v33 = vmul.f32 %v802_v31, %v704_v24 }
 0x101   : > { %v755_v34 = vpop.f32.mrf.mxu2  ;;  %v660_v35 = vpop.f32.mrf.mxu0 }
 0x102   : > { %v804_v36 = vpop.f32.mrf.mxu3  ;;  %v709_v37 = vpop.f32.mrf.mxu1  ;;  %v840_v19 = vmul.f32 %v755_v34, %v657_v29 }
 0x103   : > { %v841_v21 = vmul.f32 %v804_v36, %v706_v32  ;;  %v938_v36 = vld [vmem:[%s1844_s5 + $0x10] sm:$0xff] }
 0x104   : > { %v862_v23 = vpack.c.bf16 %v840_v19, %v838_v30  ;;  %v1039_v19 = vld [vmem:[%s1845_s6] sm:$0xff] }
 0x105   : > { %v863_v24 = vpack.c.bf16 %v841_v21, %v839_v33  ;;  %v1045_v21 = vld [vmem:[%s1846_s7 + $0x10] sm:$0xff] }
 0x109   : > { %v758_v38 = vpop.f32.mrf.mxu2  ;;  %v662_v39 = vpop.f32.mrf.mxu0 }
 0x10a   : > { %v807_v40 = vpop.f32.mrf.mxu3  ;;  %v711_v41 = vpop.f32.mrf.mxu1  ;;  %v842_v17 = vmul.f32 %v758_v38, %v660_v35 }
 0x10b   : > { %v843_v18 = vmul.f32 %v807_v40, %v709_v37  ;;  %v1043_v37 = vld [vmem:[%s1846_s7] sm:$0xff] }
 0x111   : > { %v760_v42 = vpop.f32.mrf.mxu2  ;;  %v665_v44 = vpop.f32.mrf.mxu0 }
 0x112   : > { %v809_v43 = vpop.f32.mrf.mxu3  ;;  %v714_v45 = vpop.f32.mrf.mxu1  ;;  %v844_v11 = vmul.f32 %v760_v42, %v662_v39  ;;  %v932_v42 = vld [vmem:[%s1843_s4] sm:$0xff] }
 0x113   : > { %v845_v15 = vmul.f32 %v809_v43, %v711_v41 }
 0x114   : > { %v864_v20 = vpack.c.bf16 %v844_v11, %v842_v17  ;;  %v1046_v11 = vld [vmem:[%s1846_s7 + $0x18] sm:$0xff] }
 0x115   : > { %v865_v22 = vpack.c.bf16 %v845_v15, %v843_v18 }
 0x119   : > { %v763_v46 = vpop.f32.mrf.mxu2  ;;  %v667_v50 = vpop.f32.mrf.mxu0 }
 0x11a   : > { %v812_v49 = vpop.f32.mrf.mxu3  ;;  %v716_v51 = vpop.f32.mrf.mxu1  ;;  %v846_v9 = vmul.f32 %v763_v46, %v665_v44  ;;  %v1044_v44 = vld [vmem:[%s1846_s7 + $0x8] sm:$0xff]  ;;  %v934_v46 = vld [vmem:[%s1843_s4 + $0x10] sm:$0xff] }
 0x11b   : > { %v847_v10 = vmul.f32 %v812_v49, %v714_v45  ;;  %v933_v45 = vld [vmem:[%s1843_s4 + $0x8] sm:$0xff]  ;;  %v935_v49 = vld [vmem:[%s1843_s4 + $0x18] sm:$0xff] }
 0x121   : > { %v765_v52 = vpop.f32.mrf.mxu2  ;;  %v670_v54 = vpop.f32.mrf.mxu0 }
 0x122   : > { %v814_v53 = vpop.f32.mrf.mxu3  ;;  %v719_v55 = vpop.f32.mrf.mxu1  ;;  %v848_v5 = vmul.f32 %v765_v52, %v667_v50 }
 0x123   : > { %v849_v7 = vmul.f32 %v814_v53, %v716_v51 }
 0x124   : > { %v866_v14 = vpack.c.bf16 %v848_v5, %v846_v9 }
 0x125   : > { %v867_v16 = vpack.c.bf16 %v849_v7, %v847_v10 }
 0x129   : > { %v768_v56 = vpop.f32.mrf.mxu2  ;;  %v672_v58 = vpop.f32.mrf.mxu0 }
 0x12a   : > { %v817_v57 = vpop.f32.mrf.mxu3  ;;  %v850_v60 = vmul.f32 %v768_v56, %v670_v54  ;;  %v721_v63 = vpop.f32.mrf.mxu1 }
 0x12b   : > { %v851_v3 = vmul.f32 %v817_v57, %v719_v55 }
 0x131   : > { %v770_v59 = vpop.f32.mrf.mxu2 }
 0x132   : > { %v852_v0 = vmul.f32 %v770_v59, %v672_v58  ;;  %v819_v2 = vpop.f32.mrf.mxu3 }
 0x133   : > { %v853_v4 = vmul.f32 %v819_v2, %v721_v63 }
 0x134   : > { %v868_v6 = vpack.c.bf16 %v852_v0, %v850_v60 }
 0x135   : > { %v869_v8 = vpack.c.bf16 %v853_v4, %v851_v3 }
 0x136   : > { %886 = vmatpush.bf16.msrb.mxu0 %v868_v6  ;;  %1445 = vmatpush.bf16.msrb.mxu2 %v868_v6 }
 0x137   : > { %905 = vmatpush.bf16.msrb.mxu1 %v869_v8  ;;  %1453 = vmatpush.bf16.msrb.mxu3 %v869_v8 }
 0x13a   : > { %887 = vmatpush.bf16.msrb.mxu0 %v866_v14  ;;  %1446 = vmatpush.bf16.msrb.mxu2 %v866_v14 }
 0x13b   : > { %906 = vmatpush.bf16.msrb.mxu1 %v867_v16  ;;  %1454 = vmatpush.bf16.msrb.mxu3 %v867_v16 }
 0x13e   : > { %888 = vmatpush.bf16.msrb.mxu0 %v864_v20  ;;  %1447 = vmatpush.bf16.msrb.mxu2 %v864_v20 }
 0x13f   : > { %907 = vmatpush.bf16.msrb.mxu1 %v865_v22  ;;  %1455 = vmatpush.bf16.msrb.mxu3 %v865_v22  ;;  %v1040_v22 = vld [vmem:[%s1845_s6 + $0x8] sm:$0xff] }
 0x142   : > { %889 = vmatpush.bf16.msrb.mxu0 %v862_v23  ;;  %1448 = vmatpush.bf16.msrb.mxu2 %v862_v23  ;;  %v1041_v23 = vld [vmem:[%s1845_s6 + $0x10] sm:$0xff] }
 0x143   : > { %908 = vmatpush.bf16.msrb.mxu1 %v863_v24  ;;  %1456 = vmatpush.bf16.msrb.mxu3 %v863_v24  ;;  %v1042_v24 = vld [vmem:[%s1845_s6 + $0x18] sm:$0xff] }
 0x146   : > { %890 = vmatpush.bf16.msrb.mxu0 %v1730_v26  ;;  %1449 = vmatpush.bf16.msrb.mxu2 %v1730_v26 }
 0x147   : > { %909 = vmatpush.bf16.msrb.mxu1 %v1732_v27  ;;  %1457 = vmatpush.bf16.msrb.mxu3 %v1732_v27 }
 0x14a   : > { %891 = vmatpush.bf16.msrb.mxu0 %v1726_v12  ;;  %1450 = vmatpush.bf16.msrb.mxu2 %v1726_v12  ;;  %v1443_v12 = vld [vmem:[%s1842_s3] sm:$0xff] }
 0x14b   : > { %910 = vmatpush.bf16.msrb.mxu1 %v1728_v13  ;;  %1458 = vmatpush.bf16.msrb.mxu3 %v1728_v13 }
 0x14e   : > { %892 = vmatpush.bf16.msrb.mxu0 %v1722_v61  ;;  %1451 = vmatpush.bf16.msrb.mxu2 %v1722_v61  ;;  %v1491_v61 = vmov 0  }
 0x14f   : > { %911 = vmatpush.bf16.msrb.mxu1 %v1724_v62  ;;  %1459 = vmatpush.bf16.msrb.mxu3 %v1724_v62  ;;  %v937_v62 = vld [vmem:[%s1844_s5 + $0x8] sm:$0xff] }
 0x150   : > { %1471 = vset.pattern.permute.xlu0 %v1491_v61  ;;  %1472 = vset.pattern.permute.xlu1 %v1491_v61 }
 0x151   : > { %947 = vperm.xlu1 %1472, %v937_v62   ;;  %1473 = vset.pattern.permute.xlu2 %v1491_v61 }
 0x152   : > { %893 = vmatpush.bf16.msrb.mxu0 %v1718_v47  ;;  %1452 = vmatpush.bf16.msrb.mxu2 %v1718_v47 }
 0x153   : > { %912 = vmatpush.bf16.msrb.mxu1 %v1720_v48  ;;  %1460 = vmatpush.bf16.msrb.mxu3 %v1720_v48  ;;  %v936_v48 = vld [vmem:[%s1844_s5] sm:$0xff] }
 0x154   : > { %957 = vperm.xlu0 %1471, %v939_v28   ;;  %1064 = vperm.xlu2 %1473, %v1046_v11  }
 0x155   : > { %899 = vmatmul.bf16.vlgmr.msrb.gmra.mxu2 %v1444_v25  ;;  %894 = vmatmul.bf16.vlgmr.msrb.gmra.mxu0 %v1443_v12 }
 0x156   : > { %918 = vmatmul.bf16.vlgmr.msrb.gmra.mxu3 %v1444_v25  ;;  %913 = vmatmul.bf16.vlgmr.msrb.gmra.mxu1 %v1443_v12  ;;  %v1146_v25 = vld [vmem:[#allocation2] sm:$0x1] }
 0x159   : > { %942 = vperm.xlu1 %1472, %v936_v48  }
 0x15c   : > { %952 = vperm.xlu0 %1471, %v938_v36   ;;  %1059 = vperm.xlu2 %1473, %v1045_v21  }
 0x161   : > { %1049 = vperm.xlu1 %1472, %v1043_v37  }
 0x164   : > { %1054 = vperm.xlu0 %1471, %v1044_v44   ;;  %1149 = vperm.xlu2 %1473, %v1146_v25  }
 0x1c3   : > { %v948_v57 = vpop.permute.xlu1 %947 }
 0x1c6   : > { %v958_v54 = vpop.permute.xlu0 %957 }
 0x1cb   : > { %v943_v6 = vpop.permute.xlu1 %942 }
 0x1ce   : > { %v953_v59 = vpop.permute.xlu0 %952 }
 0x1d2   : > { %v895_v13 = vpop.f32.mrf.mxu0 }
 0x1d3   : > { %v914_v27 = vpop.f32.mrf.mxu1  ;;  %v924_v41 = vmax.f32 %v895_v13, 0.0  ;;  %v1065_v13 = vpop.permute.xlu2 %1064 }
 0x1d4   : > { %v925_v43 = vmax.f32 %v914_v27, 0.0  ;;  %v1050_v37 = vpop.permute.xlu1 %1049 }
 0x1d8   : > { %v900_v47 = vpop.f32.mrf.mxu2 }
 0x1d9   : > { %v919_v26 = vpop.f32.mrf.mxu3  ;;  %v928_v34 = vmax.f32 %v900_v47, 0.0 }
 0x1da   : > { %v897_v33 = vpop.f32.mrf.mxu0  ;;  %v929_v38 = vmax.f32 %v919_v26, 0.0 }
 0x1db   : > { %v916_v35 = vpop.f32.mrf.mxu1  ;;  %v926_v39 = vmax.f32 %v897_v33, 0.0  ;;  %v1060_v28 = vpop.permute.xlu2 %1059 }
 0x1dc   : > { %v927_v40 = vmax.f32 %v916_v35, 0.0 }
 0x1e0   : > { %v902_v29 = vpop.f32.mrf.mxu2 }
 0x1e1   : > { %v930_v30 = vmax.f32 %v902_v29, 0.0  ;;  %v921_v31 = vpop.f32.mrf.mxu3 }
 0x1e2   : > { %v931_v32 = vmax.f32 %v921_v31, 0.0 }
 0x1e3   : > { %985 = vmatpush.msra.mxu2 %v930_v30 }
 0x1e4   : > { %1014 = vmatpush.msra.mxu3 %v931_v32  ;;  %v1055_v32 = vpop.permute.xlu0 %1054 }
 0x1e5   : > { %986 = vmatpush.msra.mxu2 %v928_v34 }
 0x1e6   : > { %1015 = vmatpush.msra.mxu3 %v929_v38 }
 0x1e7   : > { %987 = vmatpush.msra.mxu2 %v926_v39 }
 0x1e8   : > { %1016 = vmatpush.msra.mxu3 %v927_v40 }
 0x1e9   : > { %988 = vmatpush.msra.mxu2 %v924_v41 }
 0x1ea   : > { %1017 = vmatpush.msra.mxu3 %v925_v43  ;;  %1413 = vmatmul.msk.f32.vlgmr.msra.gmra.mxu2 %vm960_vm1, %v932_v42 }
 0x1eb   : > { %1417 = vmatmul.msk.f32.vlgmr.msra.gmra.mxu3 %vm960_vm1, %v932_v42 }
 0x1f2   : > { %1414 = vmatmul.msk.f32.gmra.mxu2 %vm960_vm1, %v933_v45 }
 0x1f3   : > { %1418 = vmatmul.msk.f32.gmra.mxu3 %vm960_vm1, %v933_v45 }
 0x1fa   : > { %1415 = vmatmul.msk.f32.gmra.mxu2 %vm960_vm1, %v934_v46 }
 0x1fb   : > { %1419 = vmatmul.msk.f32.gmra.mxu3 %vm960_vm1, %v934_v46 }
 0x202   : > { %1416 = vmatmul.msk.f32.gmra.mxu2 %vm960_vm1, %v935_v49 }
 0x203   : > { %1420 = vmatmul.msk.f32.gmra.mxu3 %vm960_vm1, %v935_v49  ;;  %v1145_v49 = vld [vmem:[%s1847_s8] sm:$0x1] }
 0x26d   : > { %v990_v50 = vpop.f32.mrf.mxu2 }
 0x26e   : > { %v1019_v51 = vpop.f32.mrf.mxu3  ;;  %v991_v10 = vadd.f32 %v990_v50, %v943_v6 }
 0x26f   : > { %v1020_v15 = vadd.f32 %v1019_v51, %v943_v6  ;;  %v1150_v51 = vpop.permute.xlu2 %1149 }
 0x270   : > { %v1031_v18 = vmax.f32 %v991_v10, 0.0 }
 0x271   : > { %v1032_v20 = vmax.f32 %v1020_v15, 0.0 }
 0x275   : > { %v993_v52 = vpop.f32.mrf.mxu2 }
 0x276   : > { %v1022_v53 = vpop.f32.mrf.mxu3  ;;  %v994_v4 = vadd.f32 %v993_v52, %v948_v57  ;;  %v1152_v52 = vperm.slane %v1150_v51, 0 }
 0x277   : > { %v1023_v7 = vadd.f32 %v1022_v53, %v948_v57 }
 0x278   : > { %v1033_v16 = vmax.f32 %v994_v4, 0.0 }
 0x279   : > { %v1034_v17 = vmax.f32 %v1023_v7, 0.0 }
 0x27d   : > { %v996_v55 = vpop.f32.mrf.mxu2 }
 0x27e   : > { %v1025_v56 = vpop.f32.mrf.mxu3  ;;  %v997_v0 = vadd.f32 %v996_v55, %v953_v59 }
 0x27f   : > { %v1026_v3 = vadd.f32 %v1025_v56, %v953_v59 }
 0x280   : > { %v1035_v9 = vmax.f32 %v997_v0, 0.0 }
 0x281   : > { %v1036_v14 = vmax.f32 %v1026_v3, 0.0 }
 0x285   : > { %v999_v58 = vpop.f32.mrf.mxu2 }
 0x286   : > { %v1000_v60 = vadd.f32 %v999_v58, %v958_v54  ;;  %v1028_v63 = vpop.f32.mrf.mxu3 }
 0x287   : > { %v1029_v2 = vadd.f32 %v1028_v63, %v958_v54 }
 0x288   : > { %v1037_v5 = vmax.f32 %v1000_v60, 0.0 }
 0x289   : > { %v1038_v8 = vmax.f32 %v1029_v2, 0.0 }
 0x28a   : > { %1091 = vmatpush.msra.mxu0 %v1037_v5 }
 0x28b   : > { %1120 = vmatpush.msra.mxu1 %v1038_v8 }
 0x28c   : > { %1092 = vmatpush.msra.mxu0 %v1035_v9 }
 0x28d   : > { %1121 = vmatpush.msra.mxu1 %v1036_v14 }
 0x28e   : > { %1093 = vmatpush.msra.mxu0 %v1033_v16 }
 0x28f   : > { %1122 = vmatpush.msra.mxu1 %v1034_v17 }
 0x290   : > { %1094 = vmatpush.msra.mxu0 %v1031_v18 }
 0x291   : > { %1123 = vmatpush.msra.mxu1 %v1032_v20  ;;  %1421 = vmatmul.msk.f32.vlgmr.msra.gmra.mxu0 %vm960_vm1, %v1039_v19 }
 0x292   : > { %1425 = vmatmul.msk.f32.vlgmr.msra.gmra.mxu1 %vm960_vm1, %v1039_v19 }
 0x299   : > { %1422 = vmatmul.msk.f32.gmra.mxu0 %vm960_vm1, %v1040_v22 }
 0x29a   : > { %1426 = vmatmul.msk.f32.gmra.mxu1 %vm960_vm1, %v1040_v22 }
 0x2a1   : > { %1423 = vmatmul.msk.f32.gmra.mxu0 %vm960_vm1, %v1041_v23 }
 0x2a2   : > { %1427 = vmatmul.msk.f32.gmra.mxu1 %vm960_vm1, %v1041_v23 }
 0x2a9   : > { %1424 = vmatmul.msk.f32.gmra.mxu0 %vm960_vm1, %v1042_v24 }
 0x2aa   : > { %1428 = vmatmul.msk.f32.gmra.mxu1 %vm960_vm1, %v1042_v24 }
 0x30e   : > { %v1096_v12 = vpop.f32.mrf.mxu0 }
 0x30f   : > { %v1125_v61 = vpop.f32.mrf.mxu1  ;;  %v1097_v40 = vadd.f32 %v1096_v12, %v1050_v37 }
 0x310   : > { %v1126_v42 = vadd.f32 %v1125_v61, %v1050_v37 }
 0x311   : > { %v1137_v46 = vmax.f32 %v1097_v40, 0.0 }
 0x312   : > { %v1138_v50 = vmax.f32 %v1126_v42, 0.0 }
 0x316   : > { %v1099_v62 = vpop.f32.mrf.mxu0 }
 0x317   : > { %v1128_v47 = vpop.f32.mrf.mxu1  ;;  %v1100_v35 = vadd.f32 %v1099_v62, %v1055_v32 }
 0x318   : > { %v1129_v38 = vadd.f32 %v1128_v47, %v1055_v32 }
 0x319   : > { %v1139_v44 = vmax.f32 %v1100_v35, 0.0 }
 0x31a   : > { %v1140_v45 = vmax.f32 %v1129_v38, 0.0 }
 0x31e   : > { %v1102_v26 = vpop.f32.mrf.mxu0 }
 0x31f   : > { %v1131_v27 = vpop.f32.mrf.mxu1  ;;  %v1103_v31 = vadd.f32 %v1102_v26, %v1060_v28 }
 0x320   : > { %v1132_v34 = vadd.f32 %v1131_v27, %v1060_v28 }
 0x321   : > { %v1141_v41 = vmax.f32 %v1103_v31, 0.0 }
 0x322   : > { %v1142_v43 = vmax.f32 %v1132_v34, 0.0 }
 0x326   : > { %v1105_v48 = vpop.f32.mrf.mxu0 }
 0x327   : > { %v1106_v29 = vadd.f32 %v1105_v48, %v1065_v13  ;;  %v1134_v30 = vpop.f32.mrf.mxu1 }
 0x328   : > { %v1135_v33 = vadd.f32 %v1134_v30, %v1065_v13 }
 0x329   : > { %v1143_v36 = vmax.f32 %v1106_v29, 0.0 }
 0x32a   : > { %v1144_v39 = vmax.f32 %v1135_v33, 0.0 }
 0x32b   : > { %1168 = vmatpush.msrb.mxu2 %v1143_v36 }
 0x32c   : > { %1188 = vmatpush.msrb.mxu3 %v1144_v39 }
 0x32d   : > { %1169 = vmatpush.msrb.mxu2 %v1141_v41 }
 0x32e   : > { %1189 = vmatpush.msrb.mxu3 %v1142_v43 }
 0x32f   : > { %1170 = vmatpush.msrb.mxu2 %v1139_v44 }
 0x330   : > { %1190 = vmatpush.msrb.mxu3 %v1140_v45 }
 0x331   : > { %1171 = vmatpush.msrb.mxu2 %v1137_v46 }
 0x332   : > { %1191 = vmatpush.msrb.mxu3 %v1138_v50  ;;  %1429 = vmatmul.msk.f32.vlgmr.msrb.gmra.mxu2 %vm960_vm1, %v1145_v49 }
 0x333   : > { %1430 = vmatmul.msk.f32.vlgmr.msrb.gmra.mxu3 %vm960_vm1, %v1145_v49 }
 0x3b5   : > { %v1173_v53 = vpop.f32.mrf.mxu2 }
 0x3b6   : > { %v1174_v54 = vadd.f32 %v1173_v53, %v1152_v52  ;;  %v1193_v55 = vpop.f32.mrf.mxu3 }
 0x3b7   : > { %v1194_v56 = vadd.f32 %v1193_v55, %v1152_v52 }
 0x3b8   : > { %v1431_v57 = vmul.f32 -1.442695, %v1174_v54 }
 0x3b9   : > { %v1432_v58 = vmul.f32 -1.442695, %v1194_v56 }
 0x3ba   : > { %1474 = vpow2.f32 %v1431_v57 }
 0x3bb   : > { %1476 = vpow2.f32 %v1432_v58 }
 0x3c0   : > { %v1475_v59 = vpop.eup %1474 }
 0x3c1   : > { %v1477_v60 = vpop.eup %1476  ;;  %v1202_v63 = vadd.f32 1.0, %v1475_v59 }
 0x3c2   : > { %v1203_v0 = vadd.f32 1.0, %v1477_v60 }
 0x3c3   : > { %1478 = vrcp.f32 %v1202_v63  ;;  %vm1209_vm3 = vweird.f32 %v1202_v63  ;;  %v1215_v15 = vand.u32 2147483648, %v1202_v63  ;;  %v1213_v17 = vand.u32 2147483647, %v1202_v63 }
 0x3c4   : > { %1480 = vrcp.f32 %v1203_v0  ;;  %v1230_v9 = vand.u32 2147483648, %v1203_v0  ;;  %v1228_v11 = vand.u32 2147483647, %v1203_v0  ;;  %vm1224_vm6 = vweird.f32 %v1203_v0 }
 0x3c5   : > { %v1216_v22 = vor.u32 1.1754944e-38, %v1215_v15  ;;  %vm1214_vm10 = vcmp.eq.f32.partialorder %v1213_v17, 8.507059e+37 }
 0x3c6   : > { %v1231_v19 = vor.u32 1.1754944e-38, %v1230_v9  ;;  %vm1229_vm7 = vcmp.eq.f32.partialorder %v1228_v11, 8.507059e+37 }
 0x3c9   : > { %v1479_v2 = vpop.eup %1478 }
 0x3ca   : > { %v1481_v3 = vpop.eup %1480  ;;  %v1205_v4 = vmul.f32 %v1479_v2, %v1202_v63  ;;  %vm1210_vm15 = vweird.f32 %v1479_v2 }
 0x3cb   : > { %v1220_v5 = vmul.f32 %v1481_v3, %v1203_v0  ;;  %vm1225_vm2 = vweird.f32 %v1481_v3  ;;  %vm1825_vm5 = vmor %vm1209_vm3, %vm1210_vm15 }
 0x3cc   : > { %v1206_v6 = vsub.f32 1.0, %v1205_v4  ;;  %vm1226_vm4 = vmor %vm1224_vm6, %vm1225_vm2 }
 0x3cd   : > { %v1221_v7 = vsub.f32 1.0, %v1220_v5 }
 0x3ce   : > { %v1207_v8 = vmul.f32 %v1479_v2, %v1206_v6 }
 0x3cf   : > { %v1222_v10 = vmul.f32 %v1481_v3, %v1221_v7 }
 0x3d0   : > { %v1208_v14 = vadd.f32 %v1479_v2, %v1207_v8 }
 0x3d1   : > { %v1223_v18 = vadd.f32 %v1481_v3, %v1222_v10 }
 0x3d2   : > { %v1212_v20 = vsel %vm1825_vm5, %v1479_v2, %v1208_v14 }
 0x3d3   : > { %v1227_v21 = vsel %vm1226_vm4, %v1481_v3, %v1223_v18  ;;  %v1217_v25 = vsel %vm1214_vm10, %v1216_v22, %v1212_v20 }
 0x3d4   : > { %v1232_v23 = vsel %vm1229_vm7, %v1231_v19, %v1227_v21 }
 0x3d5   : > { %v1236_v24 = vrot.slane %v1232_v23, 7 }
 0x3d7   : > { %v1238_v12 = vsel %vm1237_vm9, %v1217_v25, %v1236_v24 }
 0x3d8   : > { %1244 = vst.msk [vmem:[%s377_s22] sm:$0x3] %vm1242_vm8, %v1238_v12 }
 0x3d9 PF: > { %s22_s15 = sadd.s32 1, %s1488_s15  }
 0x3da   : > { %p19_p4 = scmp.ge.s32.totalorder %s22_s15, 4  }
 0x3dc   :  { %21 = sbr.rel (!%p19_p4) target bundleno = 3 (0x3), region = 93 }

</bundles_post_ra>
